<compile_context>
chip_gen: v7x
topology: tpu7x:2x2x1
jax: 0.10.0
libtpu: 0.0.40
codegen_flags: <defaults>
</compile_context>

<pallas_src>
import functools

import jax
import jax.numpy as jnp
from jax import lax
from jax.experimental import pallas as pl
from jax.experimental.pallas import tpu as pltpu


# OGB get_bond_feature_dims() -> [5, 6, 2]; module uses Embedding(dim + 1, emb_dim)
BOND_FEATURE_DIMS = [5, 6, 2]
_VOCAB_SIZES = [d + 1 for d in BOND_FEATURE_DIMS]            # [6, 7, 3]

# Mixed-radix strides for the combined index: idx = a*21 + b*3 + c
_STRIDES = []
_s = 1
for _v in reversed(_VOCAB_SIZES):
    _STRIDES.append(_s)
    _s *= _v
_STRIDES = tuple(reversed(_STRIDES))                         # (21, 3, 1)
_FUSED_ROWS = _s                                             # 126
_VP = 128                                                    # padded fused rows


def _round_up(x, m):
    return ((x + m - 1) // m) * m


def _cdiv(a, b):
    return (a + b - 1) // b


def edge_encoder_kernel(attr_ref, tab_ref, out_ref, *, num_groups, strides):
    """One grid step produces a (tile_rows, Nout) lane-dense slab of output.

    attr_ref: (tile_rows, F*num_groups) int32  raw bond features, G edges/row
    tab_ref:  (num_groups*128, Nout)    bf16   block-diagonal fused table
    out_ref:  (tile_rows, Nout)                Nout is a multiple of 128
    """
    a = attr_ref[...]                                        # (R, F*G) int32
    rows = a.shape[0]
    n_feat = len(strides)
    col = lax.broadcasted_iota(jnp.int32, (rows, _VP), 1)    # (R, 128)

    parts = []
    for g in range(num_groups):
        base = n_feat * g
        # Combined mixed-radix index of edge g of each packed row (free VALU).
        comb = a[:, base:base + 1] * strides[0]
        for f in range(1, n_feat):
            comb = comb + a[:, base + f:base + f + 1] * strides[f]
        parts.append((comb == col).astype(tab_ref.dtype))    # (R, 128) bf16

    onehot = parts[0] if num_groups == 1 else jnp.concatenate(parts, axis=1)
    # Single bf16 MXU matmul (gather-as-matmul), f32 accumulate, dense store.
    out_ref[...] = jnp.dot(onehot, tab_ref[...],
                           preferred_element_type=jnp.float32
                           ).astype(out_ref.dtype)


@functools.partial(jax.jit,
                   static_argnames=("emb_dim", "tile_edges", "out_dtype"))
def edge_encoder(edge_attr, fused_table, *, emb_dim, tile_edges=4096,
                 out_dtype=jnp.float32):
    """edge_attr: [E, F] int, fused_table: [G*128, Nout] -> [E, emb_dim]."""
    E, F = edge_attr.shape
    assert F == len(_STRIDES)
    Kp, Nout = fused_table.shape
    G = Kp // _VP                                            # edges per output row

    R = _cdiv(E, G)                                          # packed rows needed
    tile_rows_req = max(8, tile_edges // G)
    depth_cap = _round_up(_cdiv(R, 4), 8)                    # >= 4 grid steps
    floor_rows = max(8, _cdiv(512, G))                       # but >= ~512 edges/step
    tile_rows = min(tile_rows_req, max(depth_cap, floor_rows), _round_up(R, 8))
    tile_rows = max(8, _round_up(tile_rows, 8))

    R_pad = _round_up(R, tile_rows)
    E_pad = R_pad * G

    attr = edge_attr.astype(jnp.int32)
    attr = jnp.pad(attr, ((0, E_pad - E), (0, 0)))           # padded rows sliced off
    attr_packed = attr.reshape(R_pad, G * F)                 # free row-major reshape

    out = pl.pallas_call(
        functools.partial(edge_encoder_kernel, num_groups=G, strides=_STRIDES),
        out_shape=jax.ShapeDtypeStruct((R_pad, Nout), out_dtype),
        grid_spec=pltpu.PrefetchScalarGridSpec(
            num_scalar_prefetch=0,
            grid=(R_pad // tile_rows,),
            in_specs=[
                pl.BlockSpec((tile_rows, G * F), lambda r: (r, 0)),   # raw features
                pl.BlockSpec((G * _VP, Nout), lambda r: (0, 0)),      # fused table
            ],
            out_specs=pl.BlockSpec((tile_rows, Nout), lambda r: (r, 0)),
        ),
        compiler_params=pltpu.CompilerParams(
            dimension_semantics=("parallel",)),
    )(attr_packed, fused_table)

    if Nout == G * emb_dim:
        # Packed path: free reshape back to per-edge rows; only a row slice left.
        return out.reshape(R_pad * G, emb_dim)[:E]
    # Fallback path (emb_dim padded up to a multiple of 128).
    return out[:E, :emb_dim]


def init_edge_encoder_params(key, emb_dim):
    """Xavier-uniform init of each bond Embedding(dim+1, emb_dim) (unfused, f32)."""
    tables = []
    for i, v in enumerate(_VOCAB_SIZES):
        k = jax.random.fold_in(key, i)
        bound = (6.0 / (v + emb_dim)) ** 0.5
        tables.append(
            jax.random.uniform(k, (v, emb_dim), jnp.float32, -bound, bound))
    return tables


def build_fused_table(tables, emb_dim, *, dtype=jnp.bfloat16):
    """Fused product table T[a*21 + b*3 + c] = tab0[a] + tab1[b] + tab2[c].

    emb_dim < 128 and 128 % emb_dim == 0: returns the block-diagonal packed
    table of shape (G*128, G*emb_dim) with G = 128 // emb_dim.
    Otherwise: (128, round_up(emb_dim, 128)) zero-padded table.
    """
    fused = tables[0]
    for t in tables[1:]:
        fused = (fused[:, None, :] + t[None, :, :]).reshape(-1, emb_dim)
    fused = jnp.pad(fused, ((0, _VP - fused.shape[0]), (0, 0)))   # (128, emb)

    if emb_dim < 128 and 128 % emb_dim == 0:
        g = 128 // emb_dim
        eye = jnp.eye(g, dtype=fused.dtype)
        table = jnp.einsum("gh,vd->gvhd", eye, fused).reshape(g * _VP, g * emb_dim)
    else:
        d_pad = _round_up(emb_dim, 128)
        table = jnp.pad(fused, ((0, 0), (0, d_pad - emb_dim)))
    return table.astype(dtype)


def edge_encoder_reference(edge_attr, tables):
    """Pure-JAX f32 reference: sum_i tables[i][edge_attr[:, i]]."""
    out = 0.0
    for i, t in enumerate(tables):
        out = out + jnp.take(t, edge_attr[:, i], axis=0)
    return out


if __name__ == "__main__":
    key = jax.random.PRNGKey(0)
    emb_dim = 32
    num_edges = 16

    tables = init_edge_encoder_params(jax.random.fold_in(key, 100), emb_dim)
    fused_table = build_fused_table(tables, emb_dim)          # bf16, (512, 128)

    # Valid bond-feature indices: feature i in [0, BOND_FEATURE_DIMS[i]] (dim+1 rows).
    attr_cols = []
    for i, d in enumerate(BOND_FEATURE_DIMS):
        kc = jax.random.fold_in(key, 200 + i)
        attr_cols.append(
            jax.random.randint(kc, (num_edges,), 0, d + 1, dtype=jnp.int32))
    edge_attr = jnp.stack(attr_cols, axis=1)                  # [E, F] int32

    out = edge_encoder(edge_attr, fused_table, emb_dim=emb_dim)
    out = jax.block_until_ready(out)

    ref = edge_encoder_reference(edge_attr, tables)
    assert out.shape == (num_edges, emb_dim)
    # bf16 table rounding -> loose-ish tolerance vs the f32 reference.
    assert jnp.allclose(out, ref, atol=2e-2, rtol=2e-2), "mismatch vs reference"

    print("KERNEL_OK")
</pallas_src>

<mosaic_0001>
module attributes {stable_mosaic.version = 11 : i64} {
  func.func @edge_encoder_kernel(%arg0: i32, %arg1: memref<8x12xi32, #tpu.memory_space<vmem>>, %arg2: memref<512x128xbf16, #tpu.memory_space<vmem>>, %arg3: memref<8x128xf32, #tpu.memory_space<vmem>>) attributes {dimension_semantics = [#tpu.dimension_semantics<parallel>], iteration_bounds = array<i64: 1>, scalar_prefetch = 0 : i64, scratch_operands = 0 : i64, tpu.core_type = #tpu.core_type<tc>, window_params = [{transform_indices = @transform_0, window_bounds = array<i64: 8, 12>}, {pipeline_mode = #tpu.pipeline_mode<synchronous>, transform_indices = @transform_1, window_bounds = array<i64: 512, 128>}, {transform_indices = @transform_2, window_bounds = array<i64: 8, 128>}]} {
    %c0 = arith.constant 0 : index
    %c0_0 = arith.constant 0 : index
    %0 = vector.load %arg1[%c0, %c0_0] : memref<8x12xi32, #tpu.memory_space<vmem>>, vector<8x12xi32>
    %1 = tpu.iota {dimensions = array<i32: 1>} : vector<8x128xi32>
    %2 = vector.extract_strided_slice %0 {offsets = [0, 0], sizes = [8, 1], strides = [1, 1]} : vector<8x12xi32> to vector<8x1xi32>
    %c21_i32 = arith.constant 21 : i32
    %3 = vector.broadcast %c21_i32 : i32 to vector<8x1xi32>
    %4 = arith.muli %2, %3 : vector<8x1xi32>
    %5 = vector.extract_strided_slice %0 {offsets = [0, 1], sizes = [8, 1], strides = [1, 1]} : vector<8x12xi32> to vector<8x1xi32>
    %c3_i32 = arith.constant 3 : i32
    %6 = vector.broadcast %c3_i32 : i32 to vector<8x1xi32>
    %7 = arith.muli %5, %6 : vector<8x1xi32>
    %8 = arith.addi %4, %7 : vector<8x1xi32>
    %9 = vector.extract_strided_slice %0 {offsets = [0, 2], sizes = [8, 1], strides = [1, 1]} : vector<8x12xi32> to vector<8x1xi32>
    %c1_i32 = arith.constant 1 : i32
    %10 = vector.broadcast %c1_i32 : i32 to vector<8x1xi32>
    %11 = arith.muli %9, %10 : vector<8x1xi32>
    %12 = arith.addi %8, %11 : vector<8x1xi32>
    %13 = vector.broadcast %12 : vector<8x1xi32> to vector<8x128xi32>
    %14 = arith.cmpi eq, %13, %1 : vector<8x128xi32>
    %15 = arith.extui %14 : vector<8x128xi1> to vector<8x128xi32>
    %16 = arith.sitofp %15 : vector<8x128xi32> to vector<8x128xf32>
    %17 = arith.truncf %16 : vector<8x128xf32> to vector<8x128xbf16>
    %18 = vector.extract_strided_slice %0 {offsets = [0, 3], sizes = [8, 1], strides = [1, 1]} : vector<8x12xi32> to vector<8x1xi32>
    %c21_i32_1 = arith.constant 21 : i32
    %19 = vector.broadcast %c21_i32_1 : i32 to vector<8x1xi32>
    %20 = arith.muli %18, %19 : vector<8x1xi32>
    %21 = vector.extract_strided_slice %0 {offsets = [0, 4], sizes = [8, 1], strides = [1, 1]} : vector<8x12xi32> to vector<8x1xi32>
    %c3_i32_2 = arith.constant 3 : i32
    %22 = vector.broadcast %c3_i32_2 : i32 to vector<8x1xi32>
    %23 = arith.muli %21, %22 : vector<8x1xi32>
    %24 = arith.addi %20, %23 : vector<8x1xi32>
    %25 = vector.extract_strided_slice %0 {offsets = [0, 5], sizes = [8, 1], strides = [1, 1]} : vector<8x12xi32> to vector<8x1xi32>
    %c1_i32_3 = arith.constant 1 : i32
    %26 = vector.broadcast %c1_i32_3 : i32 to vector<8x1xi32>
    %27 = arith.muli %25, %26 : vector<8x1xi32>
    %28 = arith.addi %24, %27 : vector<8x1xi32>
    %29 = vector.broadcast %28 : vector<8x1xi32> to vector<8x128xi32>
    %30 = arith.cmpi eq, %29, %1 : vector<8x128xi32>
    %31 = arith.extui %30 : vector<8x128xi1> to vector<8x128xi32>
    %32 = arith.sitofp %31 : vector<8x128xi32> to vector<8x128xf32>
    %33 = arith.truncf %32 : vector<8x128xf32> to vector<8x128xbf16>
    %34 = vector.extract_strided_slice %0 {offsets = [0, 6], sizes = [8, 1], strides = [1, 1]} : vector<8x12xi32> to vector<8x1xi32>
    %c21_i32_4 = arith.constant 21 : i32
    %35 = vector.broadcast %c21_i32_4 : i32 to vector<8x1xi32>
    %36 = arith.muli %34, %35 : vector<8x1xi32>
    %37 = vector.extract_strided_slice %0 {offsets = [0, 7], sizes = [8, 1], strides = [1, 1]} : vector<8x12xi32> to vector<8x1xi32>
    %c3_i32_5 = arith.constant 3 : i32
    %38 = vector.broadcast %c3_i32_5 : i32 to vector<8x1xi32>
    %39 = arith.muli %37, %38 : vector<8x1xi32>
    %40 = arith.addi %36, %39 : vector<8x1xi32>
    %41 = vector.extract_strided_slice %0 {offsets = [0, 8], sizes = [8, 1], strides = [1, 1]} : vector<8x12xi32> to vector<8x1xi32>
    %c1_i32_6 = arith.constant 1 : i32
    %42 = vector.broadcast %c1_i32_6 : i32 to vector<8x1xi32>
    %43 = arith.muli %41, %42 : vector<8x1xi32>
    %44 = arith.addi %40, %43 : vector<8x1xi32>
    %45 = vector.broadcast %44 : vector<8x1xi32> to vector<8x128xi32>
    %46 = arith.cmpi eq, %45, %1 : vector<8x128xi32>
    %47 = arith.extui %46 : vector<8x128xi1> to vector<8x128xi32>
    %48 = arith.sitofp %47 : vector<8x128xi32> to vector<8x128xf32>
    %49 = arith.truncf %48 : vector<8x128xf32> to vector<8x128xbf16>
    %50 = vector.extract_strided_slice %0 {offsets = [0, 9], sizes = [8, 1], strides = [1, 1]} : vector<8x12xi32> to vector<8x1xi32>
    %c21_i32_7 = arith.constant 21 : i32
    %51 = vector.broadcast %c21_i32_7 : i32 to vector<8x1xi32>
    %52 = arith.muli %50, %51 : vector<8x1xi32>
    %53 = vector.extract_strided_slice %0 {offsets = [0, 10], sizes = [8, 1], strides = [1, 1]} : vector<8x12xi32> to vector<8x1xi32>
    %c3_i32_8 = arith.constant 3 : i32
    %54 = vector.broadcast %c3_i32_8 : i32 to vector<8x1xi32>
    %55 = arith.muli %53, %54 : vector<8x1xi32>
    %56 = arith.addi %52, %55 : vector<8x1xi32>
    %57 = vector.extract_strided_slice %0 {offsets = [0, 11], sizes = [8, 1], strides = [1, 1]} : vector<8x12xi32> to vector<8x1xi32>
    %c1_i32_9 = arith.constant 1 : i32
    %58 = vector.broadcast %c1_i32_9 : i32 to vector<8x1xi32>
    %59 = arith.muli %57, %58 : vector<8x1xi32>
    %60 = arith.addi %56, %59 : vector<8x1xi32>
    %61 = vector.broadcast %60 : vector<8x1xi32> to vector<8x128xi32>
    %62 = arith.cmpi eq, %61, %1 : vector<8x128xi32>
    %63 = arith.extui %62 : vector<8x128xi1> to vector<8x128xi32>
    %64 = arith.sitofp %63 : vector<8x128xi32> to vector<8x128xf32>
    %65 = arith.truncf %64 : vector<8x128xf32> to vector<8x128xbf16>
    %66 = tpu.concatenate %17, %33, %49, %65 in 1 : vector<8x128xbf16>, vector<8x128xbf16>, vector<8x128xbf16>, vector<8x128xbf16> -> vector<8x512xbf16>
    %c0_10 = arith.constant 0 : index
    %c0_11 = arith.constant 0 : index
    %67 = vector.load %arg2[%c0_10, %c0_11] : memref<512x128xbf16, #tpu.memory_space<vmem>>, vector<512x128xbf16>
    %cst = arith.constant dense<0.000000e+00> : vector<8x128xf32>
    %68 = tpu.matmul %66, %67, %cst {dimension_numbers = #tpu.dot_dimension_numbers<[1], [0], [0], [1], [0, 0, 1, 1], [], []>} : vector<8x512xbf16>, vector<512x128xbf16>, vector<8x128xf32> -> vector<8x128xf32>
    %c0_12 = arith.constant 0 : index
    %c0_13 = arith.constant 0 : index
    %69 = vector.load %arg3[%c0_12, %c0_13] : memref<8x128xf32, #tpu.memory_space<vmem>>, vector<8x128xf32>
    tpu.vector_store %arg3[%c0_12, %c0_13], %68 {strides = array<i32>} : memref<8x128xf32, #tpu.memory_space<vmem>>, vector<8x128xf32>,
    return
  }
  func.func @transform_0(%arg0: i32) -> (i32, i32) {
    %c0_i32 = arith.constant 0 : i32
    %c0_i32_0 = arith.constant 0 : i32
    return %arg0, %c0_i32 : i32, i32
  }
  func.func @transform_1(%arg0: i32) -> (i32, i32) {
    %c0_i32 = arith.constant 0 : i32
    %c0_i32_0 = arith.constant 0 : i32
    %c0_i32_1 = arith.constant 0 : i32
    return %c0_i32, %c0_i32_0 : i32, i32
  }
  func.func @transform_2(%arg0: i32) -> (i32, i32) {
    %c0_i32 = arith.constant 0 : i32
    %c0_i32_0 = arith.constant 0 : i32
    return %arg0, %c0_i32 : i32, i32
  }
}

</mosaic_0001>

<bundles_post_ra>
// kernel: edge_encoder.1
= control target key start
LH: loop header
LB: loop body
LE: loop exit
PB: predicated region body
PF: predicated region fallthrough
CT: control target
= control target key end

     0   :  { %7 = vsyncpa [#allocation3], 0  ;;  %s566_s9 = smov [#allocation2]   ;;  %s609_s0 = inlined_call_operand.vmem [shape: s32[8,12], index: 0, kind: input, shape index: {}]   ;;  %s610_s1 = inlined_call_operand.hbm [shape: bf16[512,128], index: 1, kind: input, shape index: {}]   ;;  %s611_s2 = inlined_call_operand.vmem [shape: f32[8,128], index: 2, kind: output, shape index: {}]  }
   0x1   :  { %s15_s10 = sshll.u32 %s566_s9, 4  ;;  %s542_s13 = scalar_lea.hbm %s610_s1, 4096  ;;  %s16_s10 = int_to_ptr.vmem [resolvable:$true] %s15_s10 }
   0x2   :  { %p543_p0 = scmp.ne.s32.totalorder %s610_s1, %s542_s13  ;;  %p546_p1 = scmp.lt.u32.totalorder %s542_s13, %s610_s1 }
   0x4   :  { %p548_p2 = pnand %p546_p1, %p543_p0 }
   0x6   :  { %551 = shalt.err (!%p548_p2)
}
   0x7   :  { %s552_s18 = scalar_lea.vmem %s16_s10, 4096  ;;  %p557_p4 = scmp.lt.s32.totalorder %s16_s10, %s16_s10 }
   0x8   :  { %p553_p3 = scmp.ne.s32.totalorder %s16_s10, %s552_s18  ;;  %p558_p5 = scmp.lt.s32.totalorder %s552_s18, %s552_s18 }
   0xa   :  { %p559_p6 = por %p558_p5, %p557_p4 }
   0xc   :  { %p560_p7 = pnand %p559_p6, %p553_p3 }
   0xe   :  { %563 = shalt.err (!%p560_p7)
}
   0xf   :  { %s567_s19 = smov 64   ;;  %s568_s20 = smov 4  }
  0x10   :  { %21 = dma.hbm_to_vmem [thread:$0]  %s610_s1, 4096, %s16_s10, [#allocation3], %s567_s19, %s567_s19, %s568_s20  }
  0x11   :  { %564 = dma.done.wait [#allocation3], 4096  }
  0x12   :  { %565 = vsyncadd [#allocation3], 4294963200  ;;  %v569_v0 = vmov 3   ;;  %v570_v1 = vmov 0   ;;  %v26_v2 = vld [vmem:[%s609_s0] sm:$0xff]  ;;  %s571_s25 = smov 127   ;;  %v27_v43 = vlaneseq }
  0x13   :  { %505 = vset.pattern.permute.xlu1 %v569_v0  ;;  %507 = vset.pattern.permute.xlu0 %v570_v1  ;;  %v30_v3 = vmul.u32 3, %v26_v2  ;;  %v510_v4 = vld [vmem:[#allocation2 + $0x40] sm:$0xff]   ;;  %v512_v6 = vld [vmem:[#allocation2 + $0x48] sm:$0xff]   ;;  %s572_s26 = smov 126   ;;  %v514_v10 = vld [vmem:[#allocation2 + $0x50] sm:$0xff]   ;;  %v29_v29 = vmul.u32 21, %v26_v2 }
  0x14   :  { %v511_v5 = vld [vmem:[#allocation2] sm:$0xff]   ;;  %451 = vmatprep.subr.bf16.mxu0 %v510_v4  ;;  %v513_v9 = vld [vmem:[#allocation2 + $0x8] sm:$0xff]   ;;  %v515_v13 = vld [vmem:[#allocation2 + $0x10] sm:$0xff]   ;;  %v573_v38 = vmov 9   ;;  %v574_v42 = vmov 6   ;;  %v28_v44 = vand.u32 127, %v27_v43 }
  0x15   :  { %31 = vrot.lane.b32.xlu0 %v30_v3, %s571_s25  ;;  %v516_v7 = vld [vmem:[#allocation2 + $0xc0] sm:$0xff]   ;;  %452 = vmatpush3.bf16.msra.mxu0 %v511_v5  ;;  %v520_v11 = vld [vmem:[#allocation2 + $0xc8] sm:$0xff]   ;;  %v518_v14 = vld [vmem:[#allocation2 + $0x58] sm:$0xff]   ;;  %v575_v47 = vmov 1.0|1.0  }
  0x16   :  { %v517_v8 = vld [vmem:[#allocation2 + $0x80] sm:$0xff]   ;;  %453 = vmatprep.subr.bf16.mxu0 %v512_v6  ;;  %473 = vmatprep.subr.bf16.mxu1 %v516_v7  ;;  %v521_v12 = vld [vmem:[#allocation2 + $0x88] sm:$0xff]   ;;  %v524_v15 = vld [vmem:[#allocation2 + $0xd0] sm:$0xff]  }
  0x17   :  { %474 = vmatpush3.bf16.msra.mxu1 %v517_v8  ;;  %v525_v16 = vld [vmem:[#allocation2 + $0x90] sm:$0xff]   ;;  %v519_v17 = vld [vmem:[#allocation2 + $0x18] sm:$0xff]   ;;  %v522_v18 = vld [vmem:[#allocation2 + $0x60] sm:$0xff]  }
  0x18   :  { %475 = vmatprep.subr.bf16.mxu1 %v520_v11  ;;  %v528_v19 = vld [vmem:[#allocation2 + $0xd8] sm:$0xff]   ;;  %v523_v21 = vld [vmem:[#allocation2 + $0x20] sm:$0xff]   ;;  %v526_v22 = vld [vmem:[#allocation2 + $0x68] sm:$0xff]  }
  0x19   :  { %34 = vrot.lane.b32.xlu0 %v26_v2, %s572_s26  ;;  %454 = vmatpush3.bf16.msra.mxu0 %v513_v9  ;;  %v529_v20 = vld [vmem:[#allocation2 + $0x98] sm:$0xff]   ;;  %v527_v23 = vld [vmem:[#allocation2 + $0x28] sm:$0xff]   ;;  %v532_v24 = vld [vmem:[#allocation2 + $0xe0] sm:$0xff]  }
  0x1a   :  { %455 = vmatprep.subr.bf16.mxu0 %v514_v10  ;;  %v533_v25 = vld [vmem:[#allocation2 + $0xa0] sm:$0xff]   ;;  %v530_v26 = vld [vmem:[#allocation2 + $0x70] sm:$0xff]   ;;  %v534_v28 = vld [vmem:[#allocation2 + $0x78] sm:$0xff]  }
  0x1b   :  { %476 = vmatpush3.bf16.msra.mxu1 %v521_v12  ;;  %v531_v27 = vld [vmem:[#allocation2 + $0x30] sm:$0xff]   ;;  %v535_v34 = vld [vmem:[#allocation2 + $0x38] sm:$0xff]   ;;  %v536_v35 = vld [vmem:[#allocation2 + $0xe8] sm:$0xff]  }
  0x1c   :  { %477 = vmatprep.subr.bf16.mxu1 %v524_v15  ;;  %v537_v36 = vld [vmem:[#allocation2 + $0xa8] sm:$0xff]   ;;  %v538_v37 = vld [vmem:[#allocation2 + $0xf0] sm:$0xff]   ;;  %v540_v40 = vld [vmem:[#allocation2 + $0xf8] sm:$0xff]  }
  0x1d   :  { %456 = vmatpush3.bf16.msra.mxu0 %v515_v13  ;;  %v539_v39 = vld [vmem:[#allocation2 + $0xb0] sm:$0xff]   ;;  %v541_v41 = vld [vmem:[#allocation2 + $0xb8] sm:$0xff]  }
  0x1e   :  { %457 = vmatprep.subr.bf16.mxu0 %v518_v14 }
  0x1f   :  { %478 = vmatpush3.bf16.msra.mxu1 %v525_v16 }
  0x20   :  { %479 = vmatprep.subr.bf16.mxu1 %v528_v19 }
  0x21   :  { %458 = vmatpush3.bf16.msra.mxu0 %v519_v17 }
  0x22   :  { %459 = vmatprep.subr.bf16.mxu0 %v522_v18 }
  0x23   :  { %480 = vmatpush3.bf16.msra.mxu1 %v529_v20 }
  0x24   :  { %481 = vmatprep.subr.bf16.mxu1 %v532_v24 }
  0x25   :  { %460 = vmatpush3.bf16.msra.mxu0 %v523_v21 }
  0x26   :  { %461 = vmatprep.subr.bf16.mxu0 %v526_v22 }
  0x27   :  { %482 = vmatpush3.bf16.msra.mxu1 %v533_v25 }
  0x28   :  { %483 = vmatprep.subr.bf16.mxu1 %v536_v35 }
  0x29   :  { %462 = vmatpush3.bf16.msra.mxu0 %v527_v23 }
  0x2a   :  { %463 = vmatprep.subr.bf16.mxu0 %v530_v26 }
  0x2b   :  { %484 = vmatpush3.bf16.msra.mxu1 %v537_v36 }
  0x2c   :  { %485 = vmatprep.subr.bf16.mxu1 %v538_v37 }
  0x2d   :  { %464 = vmatpush3.bf16.msra.mxu0 %v531_v27 }
  0x2e   :  { %465 = vmatprep.subr.bf16.mxu0 %v534_v28 }
  0x2f   :  { %486 = vmatpush3.bf16.msra.mxu1 %v539_v39 }
  0x30   :  { %487 = vmatprep.subr.bf16.mxu1 %v540_v40 }
  0x31   :  { %466 = vmatpush3.bf16.msra.mxu0 %v535_v34 }
  0x33   :  { %488 = vmatpush3.bf16.msra.mxu1 %v541_v41 }
  0x87   :  { %v32_v30 = vpop.permute.xlu0 %31 }
  0x88   :  { %v33_v31 = vadd.s32 %v32_v30, %v29_v29 }
  0x8b   :  { %v35_v32 = vpop.permute.xlu0 %34 }
  0x8c   :  { %v36_v33 = vadd.s32 %v35_v32, %v33_v31 }
  0x8e   :  { %38 = vperm.xlu0 %507, %v36_v33   ;;  %45 = vperm.xlu1 %505, %v36_v33  }
  0x92   :  { %506 = vset.pattern.permute.xlu1 %v573_v38  ;;  %509 = vset.pattern.permute.xlu0 %v573_v38 }
  0x93   :  { %59 = vperm.xlu1 %506, %v36_v33  }
  0x97   :  { %508 = vset.pattern.permute.xlu1 %v574_v42 }
  0x98   :  { %52 = vperm.xlu1 %508, %v36_v33  }
 0x10d   :  { %v39_v45 = vpop.permute.xlu0 %38  ;;  %v46_v46 = vpop.permute.xlu1 %45 }
 0x10e   :  { %vm40_vm0 = vcmp.eq.s32.totalorder %v39_v45, %v28_v44  ;;  %vm47_vm1 = vcmp.eq.s32.totalorder %v46_v46, %v28_v44 }
 0x10f   :  { %vm445_vm2 = vmpackc.low %vm40_vm0, %vm40_vm0 }
 0x110   :  { %vm443_vm3 = vmpackc.low %vm47_vm1, %vm47_vm1 }
 0x111   :  { %444 = vmatprep.mubr.msk.bf16.mxu0 %vm443_vm3, %v575_v47 }
 0x112   :  { %446 = vmatmul.mubr.msk.bf16.vlgmr.msra.gmra.mrb[0].mxu0 %vm445_vm2, %v575_v47  ;;  %v60_v48 = vpop.permute.xlu1 %59 }
 0x113   :  { %vm61_vm4 = vcmp.eq.s32.totalorder %v60_v48, %v28_v44 }
 0x114   :  { %vm447_vm5 = vmpackc.low %vm61_vm4, %vm61_vm4 }
 0x115   :  { %448 = vmatprep.mubr.msk.bf16.mxu1 %vm447_vm5, %v575_v47 }
 0x117   :  { %v53_v49 = vpop.permute.xlu1 %52 }
 0x118   :  { %vm54_vm6 = vcmp.eq.s32.totalorder %v53_v49, %v28_v44 }
 0x119   :  { %vm449_vm7 = vmpackc.low %vm54_vm6, %vm54_vm6 }
 0x11a   :  { %450 = vmatmul.mubr.msk.bf16.vlgmr.msra.gmra.mrb[0].mxu1 %vm449_vm7, %v575_v47 }
 0x1e5   :  { %v467_v50 = vpop.f32.mrb[0].mxu0 }
 0x1e6   :  { %v468_v51 = vpop.f32.mrb[1].mxu0 }
 0x1e7   :  { %v469_v52 = vadd.f32 %v468_v51, %v467_v50  ;;  %v470_v53 = vpop.f32.mrb[2].mxu0 }
 0x1e8   :  { %v471_v54 = vpop.f32.mrb[3].mxu0 }
 0x1ed   :  { %v489_v55 = vpop.f32.mrb[0].mxu1 }
 0x1ee   :  { %v490_v56 = vpop.f32.mrb[1].mxu1 }
 0x1ef   :  { %v491_v57 = vadd.f32 %v490_v56, %v489_v55  ;;  %v492_v58 = vpop.f32.mrb[2].mxu1 }
 0x1f0   :  { %v493_v59 = vpop.f32.mrb[3].mxu1 }
 0x1f1   :  { %v396_v60 = vadd.f32 %v491_v57, %v469_v52 }
 0x1f3   :  { %401 = vst [vmem:[%s611_s2] sm:$0xff] %v396_v60 }
 0x1f4   :  { %406 = vsyncpa [#allocation3], 1 }

</bundles_post_ra>
